<compile_context>
chip_gen: v6e
topology: v6e:2x2x1
jax: 0.10.0
libtpu: 0.0.40
codegen_flags: <defaults>
</compile_context>

<pallas_src>
import functools
import math

import jax
import jax.numpy as jnp
from jax import lax
from jax.experimental import pallas as pl
from jax.experimental.pallas import tpu as pltpu


# -------------------- model hyper-parameters (small, deterministic) -----------------
B = 2          # batch
L = 8          # sequence length
D_MODEL = 32   # d_model
N_HEAD = 4     # number of heads
FFN_HIDDEN = 64
EPS = 1e-12
LANES = 128    # lane width the parameter slab is padded to


def _layernorm(x, gamma, beta):
    # x: (N, D); gamma/beta: (1, D).  rsqrt -> EUP slot instead of VALU divide/sqrt.
    mean = jnp.mean(x, axis=-1, keepdims=True)
    var = jnp.mean((x - mean) ** 2, axis=-1, keepdims=True)   # unbiased=False
    return gamma * ((x - mean) * lax.rsqrt(var + EPS)) + beta


def encoder_layer_kernel(x_ref, mask_ref, p_ref, o_ref, *,
                         batch, length, d_model, n_head, ffn_hidden):
    d_t = d_model // n_head

    # ---- static row offsets into the packed parameter slab (slices are free) -------
    r_wqkv = 0
    r_wc = r_wqkv + d_model
    r_w1 = r_wc + d_model
    r_w2 = r_w1 + d_model
    r_vec = r_w2 + ffn_hidden
    (r_bqkv, r_bc, r_g1, r_be1, r_b1, r_b2, r_g2, r_be2) = range(r_vec, r_vec + 8)

    x = x_ref[...]                                             # (B*L, D)

    # ---- fused QKV projection; 1/sqrt(d_t) already folded into the Q columns -------
    wqkv = p_ref[r_wqkv:r_wqkv + d_model, 0:3 * d_model]       # (D, 3D)
    bqkv = p_ref[r_bqkv:r_bqkv + 1, 0:3 * d_model]             # (1, 3D)
    qkv = jnp.dot(x, wqkv, preferred_element_type=jnp.float32) + bqkv   # (B*L, 3D)
    qkv = qkv.reshape(batch, length, 3 * d_model)              # (B, L, 3D) leading split

    mask = mask_ref[...]                                       # (B, L, L)

    # ---- multi-head attention: loop over heads, dots batched over batch ------------
    proj = jnp.zeros((batch * length, d_model), jnp.float32)
    for h in range(n_head):                                    # static unroll (4)
        c0 = h * d_t
        q_h = qkv[:, :, c0:c0 + d_t]                                       # (B, L, d_t)
        k_h = qkv[:, :, d_model + c0:d_model + c0 + d_t]                   # (B, L, d_t)
        v_h = qkv[:, :, 2 * d_model + c0:2 * d_model + c0 + d_t]           # (B, L, d_t)

        # scaled scores (scale folded into q); batched over B, no explicit transpose
        s = jnp.einsum("bqd,bkd->bqk", q_h, k_h,
                       preferred_element_type=jnp.float32)                 # (B, L, L)
        s = s * mask                      # multiplicative mask (reference semantics)

        # numerically-stable softmax; divide -> single EUP approximate reciprocal
        s = s - jnp.max(s, axis=-1, keepdims=True)
        e = jnp.exp(s)
        probs = e * pl.reciprocal(jnp.sum(e, axis=-1, keepdims=True), approx=True)

        o_h = jnp.einsum("bqk,bkd->bqd", probs, v_h,
                         preferred_element_type=jnp.float32)               # (B, L, d_t)

        # fold this head straight into the concat-projection (no lane/row concat)
        wc_h = p_ref[r_wc + c0:r_wc + c0 + d_t, 0:d_model]                 # (d_t, D)
        proj = proj + jnp.dot(o_h.reshape(batch * length, d_t), wc_h,
                              preferred_element_type=jnp.float32)          # (B*L, D)

    attn = proj + p_ref[r_bc:r_bc + 1, 0:d_model]              # (B*L, D)

    # dropout1 -> identity (eval mode)
    x1 = _layernorm(attn + x,
                    p_ref[r_g1:r_g1 + 1, 0:d_model],
                    p_ref[r_be1:r_be1 + 1, 0:d_model])

    # ---- position-wise feed forward -------------------------------------------------
    w1 = p_ref[r_w1:r_w1 + d_model, 0:ffn_hidden]
    b1 = p_ref[r_b1:r_b1 + 1, 0:ffn_hidden]
    w2 = p_ref[r_w2:r_w2 + ffn_hidden, 0:d_model]
    b2 = p_ref[r_b2:r_b2 + 1, 0:d_model]
    h1 = jnp.maximum(jnp.dot(x1, w1, preferred_element_type=jnp.float32) + b1, 0.0)
    f = jnp.dot(h1, w2, preferred_element_type=jnp.float32) + b2    # dropout -> identity

    # dropout2 -> identity (eval mode)
    x2 = _layernorm(f + x1,
                    p_ref[r_g2:r_g2 + 1, 0:d_model],
                    p_ref[r_be2:r_be2 + 1, 0:d_model])

    o_ref[...] = x2.astype(o_ref.dtype)
    # TODO(synk): lane-dense (B*L*D/128, 128) output repack and full B*H-batched
    # attention need a lane<->batch relayout that does not pay off at D=32; revisit
    # (with bf16 MXU casts and a row-tiled parallel grid for v7x megacore) at scale.


def _pack_params(params, d_model=D_MODEL, n_head=N_HEAD, ffn_hidden=FFN_HIDDEN):
    """One-time parameter transform: fuse QKV, fold the softmax scale into Q, and
    pack every weight/bias into a single lane-dense (168, 128) f32 slab."""
    scale = 1.0 / math.sqrt(d_model // n_head)
    wqkv = jnp.concatenate([params["wq"] * scale, params["wk"], params["wv"]], axis=1)
    bqkv = jnp.concatenate([params["bq"] * scale, params["bk"], params["bv"]], axis=1)

    def pad_lanes(a):
        a = a.astype(jnp.float32)
        return jnp.pad(a, ((0, 0), (0, LANES - a.shape[1])))

    blocks = [wqkv,                      # rows   0.. 31
              params["wc"],              # rows  32.. 63
              params["w1"],              # rows  64.. 95
              params["w2"],              # rows  96..159
              bqkv, params["bc"],        # rows 160, 161
              params["g1"], params["be1"],   # 162, 163
              params["b1"], params["b2"],    # 164, 165
              params["g2"], params["be2"]]   # 166, 167
    return jnp.concatenate([pad_lanes(blk) for blk in blocks], axis=0)   # (168, 128)


@jax.jit
def encoder_layer(x, src_mask, param_slab):
    """x: (B, L, D) f32, src_mask: (B, L, L) f32, param_slab: (168, 128) f32."""
    b, l, d = x.shape
    x2d = x.reshape(b * l, d)            # free wrapper-level reshape

    kernel = functools.partial(
        encoder_layer_kernel, batch=b, length=l, d_model=d,
        n_head=N_HEAD, ffn_hidden=FFN_HIDDEN)

    # Single grid step: whole activation slab + packed weights VMEM-resident
    # (no per-step weight re-DMA; grid/megacore sharding only pays off at scale).
    out2d = pl.pallas_call(
        kernel,
        out_shape=jax.ShapeDtypeStruct((b * l, d), x.dtype),
        in_specs=[pl.BlockSpec(memory_space=pltpu.MemorySpace.VMEM)] * 3,
        out_specs=pl.BlockSpec(memory_space=pltpu.MemorySpace.VMEM),
    )(x2d, src_mask.astype(jnp.float32), param_slab)
    return out2d.reshape(b, l, d)


# -------------------- pure-JAX reference (for a correctness check) ------------------
def encoder_layer_ref(x, src_mask, params):
    def layernorm(t, g, bb):
        mean = jnp.mean(t, axis=-1, keepdims=True)
        var = jnp.mean((t - mean) ** 2, axis=-1, keepdims=True)
        return g * ((t - mean) / jnp.sqrt(var + EPS)) + bb

    bsz, l, d = x.shape
    d_t = d // N_HEAD
    q = x @ params["wq"] + params["bq"]
    k = x @ params["wk"] + params["bk"]
    v = x @ params["wv"] + params["bv"]

    def split(t):
        return t.reshape(bsz, l, N_HEAD, d_t).transpose(0, 2, 1, 3)

    qh, kh, vh = split(q), split(k), split(v)
    score = jnp.einsum("bhqd,bhkd->bhqk", qh, kh) / math.sqrt(d_t)
    score = score * src_mask[:, None, :, :]
    score = jax.nn.softmax(score, axis=-1)
    out = jnp.einsum("bhqk,bhkd->bhqd", score, vh)
    out = out.transpose(0, 2, 1, 3).reshape(bsz, l, d)
    out = out @ params["wc"] + params["bc"]
    x1 = layernorm(out + x, params["g1"], params["be1"])
    h1 = jnp.maximum(x1 @ params["w1"] + params["b1"], 0.0)
    f = h1 @ params["w2"] + params["b2"]
    return layernorm(f + x1, params["g2"], params["be2"])


def init_params(key):
    ks = jax.random.split(key, 8)
    s = 0.1
    # Linear weights stored pre-transposed as (in, out); biases/ln params as (1, dim)
    return {
        "wq": s * jax.random.normal(ks[0], (D_MODEL, D_MODEL), jnp.float32),
        "bq": s * jax.random.normal(ks[1], (1, D_MODEL), jnp.float32),
        "wk": s * jax.random.normal(ks[2], (D_MODEL, D_MODEL), jnp.float32),
        "bk": s * jax.random.normal(ks[3], (1, D_MODEL), jnp.float32),
        "wv": s * jax.random.normal(ks[4], (D_MODEL, D_MODEL), jnp.float32),
        "bv": s * jax.random.normal(ks[5], (1, D_MODEL), jnp.float32),
        "wc": s * jax.random.normal(ks[6], (D_MODEL, D_MODEL), jnp.float32),
        "bc": s * jax.random.normal(ks[7], (1, D_MODEL), jnp.float32),
        "g1": jnp.ones((1, D_MODEL), jnp.float32),
        "be1": jnp.zeros((1, D_MODEL), jnp.float32),
        "w1": s * jax.random.normal(jax.random.fold_in(key, 100), (D_MODEL, FFN_HIDDEN), jnp.float32),
        "b1": s * jax.random.normal(jax.random.fold_in(key, 101), (1, FFN_HIDDEN), jnp.float32),
        "w2": s * jax.random.normal(jax.random.fold_in(key, 102), (FFN_HIDDEN, D_MODEL), jnp.float32),
        "b2": s * jax.random.normal(jax.random.fold_in(key, 103), (1, D_MODEL), jnp.float32),
        "g2": jnp.ones((1, D_MODEL), jnp.float32),
        "be2": jnp.zeros((1, D_MODEL), jnp.float32),
    }


if __name__ == "__main__":
    key = jax.random.PRNGKey(0)
    kx, km, kp = jax.random.split(key, 3)

    x = jax.random.normal(kx, (B, L, D_MODEL), jnp.float32)
    # multiplicative mask in {0,1}, e.g. padding mask broadcast to (B, L, L)
    src_mask = (jax.random.uniform(km, (B, L, L)) > 0.2).astype(jnp.float32)
    params = init_params(kp)
    param_slab = _pack_params(params)     # one-time parameter transform

    out = jax.block_until_ready(encoder_layer(x, src_mask, param_slab))
    ref = encoder_layer_ref(x, src_mask, params)

    assert out.shape == (B, L, D_MODEL)
    err = float(jnp.max(jnp.abs(out - ref)))
    # approx=True EUP reciprocal in the softmax (denominator >= 1 after row-max
    # subtraction) + f32 everywhere else: 2e-3 bound leaves margin for the
    # approximate-reciprocal path while still catching real bugs.
    assert err < 2e-3, f"Pallas kernel mismatch vs JAX reference (max abs err {err})"
    print("KERNEL_OK")
</pallas_src>

<mosaic_0001>
module attributes {stable_mosaic.version = 11 : i64} {
  func.func @encoder_layer_kernel(%arg0: memref<16x32xf32, #tpu.memory_space<vmem>>, %arg1: memref<2x8x8xf32, #tpu.memory_space<vmem>>, %arg2: memref<168x128xf32, #tpu.memory_space<vmem>>, %arg3: memref<16x32xf32, #tpu.memory_space<vmem>>) attributes {dimension_semantics = [], scalar_prefetch = 0 : i64, scratch_operands = 0 : i64, tpu.core_type = #tpu.core_type<tc>} {
    %c0 = arith.constant 0 : index
    %c0_0 = arith.constant 0 : index
    %0 = vector.load %arg0[%c0, %c0_0] : memref<16x32xf32, #tpu.memory_space<vmem>>, vector<16x32xf32>
    %c0_1 = arith.constant 0 : index
    %c0_2 = arith.constant 0 : index
    %1 = vector.load %arg2[%c0_1, %c0_2] : memref<168x128xf32, #tpu.memory_space<vmem>>, vector<32x96xf32>
    %c160 = arith.constant 160 : index
    %c0_3 = arith.constant 0 : index
    %2 = vector.load %arg2[%c160, %c0_3] : memref<168x128xf32, #tpu.memory_space<vmem>>, vector<1x96xf32>
    %cst = arith.constant dense<0.000000e+00> : vector<16x96xf32>
    %3 = tpu.matmul %0, %1, %cst {dimension_numbers = #tpu.dot_dimension_numbers<[1], [0], [0], [1], [0, 0, 1, 1], [], []>} : vector<16x32xf32>, vector<32x96xf32>, vector<16x96xf32> -> vector<16x96xf32>
    %4 = vector.broadcast %2 : vector<1x96xf32> to vector<16x96xf32>
    %5 = arith.addf %3, %4 : vector<16x96xf32>
    %6 = vector.shape_cast %5 : vector<16x96xf32> to vector<2x8x96xf32>
    %c0_4 = arith.constant 0 : index
    %c0_5 = arith.constant 0 : index
    %c0_6 = arith.constant 0 : index
    %7 = vector.load %arg1[%c0_4, %c0_5, %c0_6] : memref<2x8x8xf32, #tpu.memory_space<vmem>>, vector<2x8x8xf32>
    %cst_7 = arith.constant 0.000000e+00 : f32
    %8 = vector.broadcast %cst_7 : f32 to vector<16x32xf32>
    %9 = vector.extract_strided_slice %6 {offsets = [0, 0, 0], sizes = [2, 8, 8], strides = [1, 1, 1]} : vector<2x8x96xf32> to vector<2x8x8xf32>
    %10 = vector.extract_strided_slice %6 {offsets = [0, 0, 32], sizes = [2, 8, 8], strides = [1, 1, 1]} : vector<2x8x96xf32> to vector<2x8x8xf32>
    %11 = vector.extract_strided_slice %6 {offsets = [0, 0, 64], sizes = [2, 8, 8], strides = [1, 1, 1]} : vector<2x8x96xf32> to vector<2x8x8xf32>
    "tpu.trace_start"() <{level = 10 : i32, message = "bqd,bkd->bqk"}> : () -> ()
    %cst_8 = arith.constant dense<0.000000e+00> : vector<2x8x8xf32>
    %12 = tpu.matmul %9, %10, %cst_8 {dimension_numbers = #tpu.dot_dimension_numbers<[2], [2], [1], [1], [0, 0, 0, 1, 1, 1], [0], [0]>} : vector<2x8x8xf32>, vector<2x8x8xf32>, vector<2x8x8xf32> -> vector<2x8x8xf32>
    "tpu.trace_stop"() : () -> ()
    %13 = arith.mulf %12, %7 : vector<2x8x8xf32>
    %cst_9 = arith.constant dense<0xFF800000> : vector<2x8xf32>
    %14 = vector.multi_reduction <maximumf>, %13, %cst_9 [2] : vector<2x8x8xf32> to vector<2x8xf32>
    %15 = vector.shape_cast %14 : vector<2x8xf32> to vector<2x8x1xf32>
    %16 = vector.broadcast %15 : vector<2x8x1xf32> to vector<2x8x8xf32>
    %17 = arith.subf %13, %16 : vector<2x8x8xf32>
    %18 = math.exp %17 : vector<2x8x8xf32>
    %cst_10 = arith.constant dense<0.000000e+00> : vector<2x8xf32>
    %19 = vector.multi_reduction <add>, %18, %cst_10 [2] : vector<2x8x8xf32> to vector<2x8xf32>
    %20 = vector.shape_cast %19 : vector<2x8xf32> to vector<2x8x1xf32>
    %21 = tpu.reciprocal %20 {approx = true} : vector<2x8x1xf32> -> vector<2x8x1xf32>
    %22 = vector.broadcast %21 : vector<2x8x1xf32> to vector<2x8x8xf32>
    %23 = arith.mulf %18, %22 : vector<2x8x8xf32>
    "tpu.trace_start"() <{level = 10 : i32, message = "bqk,bkd->bqd"}> : () -> ()
    %cst_11 = arith.constant dense<0.000000e+00> : vector<2x8x8xf32>
    %24 = tpu.matmul %23, %11, %cst_11 {dimension_numbers = #tpu.dot_dimension_numbers<[2], [1], [1], [2], [0, 0, 0, 1, 1, 2], [0], [0]>} : vector<2x8x8xf32>, vector<2x8x8xf32>, vector<2x8x8xf32> -> vector<2x8x8xf32>
    "tpu.trace_stop"() : () -> ()
    %c32 = arith.constant 32 : index
    %c0_12 = arith.constant 0 : index
    %25 = vector.load %arg2[%c32, %c0_12] : memref<168x128xf32, #tpu.memory_space<vmem>>, vector<8x32xf32>
    %26 = vector.shape_cast %24 : vector<2x8x8xf32> to vector<16x8xf32>
    %cst_13 = arith.constant dense<0.000000e+00> : vector<16x32xf32>
    %27 = tpu.matmul %26, %25, %cst_13 {dimension_numbers = #tpu.dot_dimension_numbers<[1], [0], [0], [1], [0, 0, 1, 1], [], []>} : vector<16x8xf32>, vector<8x32xf32>, vector<16x32xf32> -> vector<16x32xf32>
    %28 = arith.addf %8, %27 : vector<16x32xf32>
    %29 = vector.extract_strided_slice %6 {offsets = [0, 0, 8], sizes = [2, 8, 8], strides = [1, 1, 1]} : vector<2x8x96xf32> to vector<2x8x8xf32>
    %30 = vector.extract_strided_slice %6 {offsets = [0, 0, 40], sizes = [2, 8, 8], strides = [1, 1, 1]} : vector<2x8x96xf32> to vector<2x8x8xf32>
    %31 = vector.extract_strided_slice %6 {offsets = [0, 0, 72], sizes = [2, 8, 8], strides = [1, 1, 1]} : vector<2x8x96xf32> to vector<2x8x8xf32>
    "tpu.trace_start"() <{level = 10 : i32, message = "bqd,bkd->bqk"}> : () -> ()
    %cst_14 = arith.constant dense<0.000000e+00> : vector<2x8x8xf32>
    %32 = tpu.matmul %29, %30, %cst_14 {dimension_numbers = #tpu.dot_dimension_numbers<[2], [2], [1], [1], [0, 0, 0, 1, 1, 1], [0], [0]>} : vector<2x8x8xf32>, vector<2x8x8xf32>, vector<2x8x8xf32> -> vector<2x8x8xf32>
    "tpu.trace_stop"() : () -> ()
    %33 = arith.mulf %32, %7 : vector<2x8x8xf32>
    %cst_15 = arith.constant dense<0xFF800000> : vector<2x8xf32>
    %34 = vector.multi_reduction <maximumf>, %33, %cst_15 [2] : vector<2x8x8xf32> to vector<2x8xf32>
    %35 = vector.shape_cast %34 : vector<2x8xf32> to vector<2x8x1xf32>
    %36 = vector.broadcast %35 : vector<2x8x1xf32> to vector<2x8x8xf32>
    %37 = arith.subf %33, %36 : vector<2x8x8xf32>
    %38 = math.exp %37 : vector<2x8x8xf32>
    %cst_16 = arith.constant dense<0.000000e+00> : vector<2x8xf32>
    %39 = vector.multi_reduction <add>, %38, %cst_16 [2] : vector<2x8x8xf32> to vector<2x8xf32>
    %40 = vector.shape_cast %39 : vector<2x8xf32> to vector<2x8x1xf32>
    %41 = tpu.reciprocal %40 {approx = true} : vector<2x8x1xf32> -> vector<2x8x1xf32>
    %42 = vector.broadcast %41 : vector<2x8x1xf32> to vector<2x8x8xf32>
    %43 = arith.mulf %38, %42 : vector<2x8x8xf32>
    "tpu.trace_start"() <{level = 10 : i32, message = "bqk,bkd->bqd"}> : () -> ()
    %cst_17 = arith.constant dense<0.000000e+00> : vector<2x8x8xf32>
    %44 = tpu.matmul %43, %31, %cst_17 {dimension_numbers = #tpu.dot_dimension_numbers<[2], [1], [1], [2], [0, 0, 0, 1, 1, 2], [0], [0]>} : vector<2x8x8xf32>, vector<2x8x8xf32>, vector<2x8x8xf32> -> vector<2x8x8xf32>
    "tpu.trace_stop"() : () -> ()
    %c40 = arith.constant 40 : index
    %c0_18 = arith.constant 0 : index
    %45 = vector.load %arg2[%c40, %c0_18] : memref<168x128xf32, #tpu.memory_space<vmem>>, vector<8x32xf32>
    %46 = vector.shape_cast %44 : vector<2x8x8xf32> to vector<16x8xf32>
    %cst_19 = arith.constant dense<0.000000e+00> : vector<16x32xf32>
    %47 = tpu.matmul %46, %45, %cst_19 {dimension_numbers = #tpu.dot_dimension_numbers<[1], [0], [0], [1], [0, 0, 1, 1], [], []>} : vector<16x8xf32>, vector<8x32xf32>, vector<16x32xf32> -> vector<16x32xf32>
    %48 = arith.addf %28, %47 : vector<16x32xf32>
    %49 = vector.extract_strided_slice %6 {offsets = [0, 0, 16], sizes = [2, 8, 8], strides = [1, 1, 1]} : vector<2x8x96xf32> to vector<2x8x8xf32>
    %50 = vector.extract_strided_slice %6 {offsets = [0, 0, 48], sizes = [2, 8, 8], strides = [1, 1, 1]} : vector<2x8x96xf32> to vector<2x8x8xf32>
    %51 = vector.extract_strided_slice %6 {offsets = [0, 0, 80], sizes = [2, 8, 8], strides = [1, 1, 1]} : vector<2x8x96xf32> to vector<2x8x8xf32>
    "tpu.trace_start"() <{level = 10 : i32, message = "bqd,bkd->bqk"}> : () -> ()
    %cst_20 = arith.constant dense<0.000000e+00> : vector<2x8x8xf32>
    %52 = tpu.matmul %49, %50, %cst_20 {dimension_numbers = #tpu.dot_dimension_numbers<[2], [2], [1], [1], [0, 0, 0, 1, 1, 1], [0], [0]>} : vector<2x8x8xf32>, vector<2x8x8xf32>, vector<2x8x8xf32> -> vector<2x8x8xf32>
    "tpu.trace_stop"() : () -> ()
    %53 = arith.mulf %52, %7 : vector<2x8x8xf32>
    %cst_21 = arith.constant dense<0xFF800000> : vector<2x8xf32>
    %54 = vector.multi_reduction <maximumf>, %53, %cst_21 [2] : vector<2x8x8xf32> to vector<2x8xf32>
    %55 = vector.shape_cast %54 : vector<2x8xf32> to vector<2x8x1xf32>
    %56 = vector.broadcast %55 : vector<2x8x1xf32> to vector<2x8x8xf32>
    %57 = arith.subf %53, %56 : vector<2x8x8xf32>
    %58 = math.exp %57 : vector<2x8x8xf32>
    %cst_22 = arith.constant dense<0.000000e+00> : vector<2x8xf32>
    %59 = vector.multi_reduction <add>, %58, %cst_22 [2] : vector<2x8x8xf32> to vector<2x8xf32>
    %60 = vector.shape_cast %59 : vector<2x8xf32> to vector<2x8x1xf32>
    %61 = tpu.reciprocal %60 {approx = true} : vector<2x8x1xf32> -> vector<2x8x1xf32>
    %62 = vector.broadcast %61 : vector<2x8x1xf32> to vector<2x8x8xf32>
    %63 = arith.mulf %58, %62 : vector<2x8x8xf32>
    "tpu.trace_start"() <{level = 10 : i32, message = "bqk,bkd->bqd"}> : () -> ()
    %cst_23 = arith.constant dense<0.000000e+00> : vector<2x8x8xf32>
    %64 = tpu.matmul %63, %51, %cst_23 {dimension_numbers = #tpu.dot_dimension_numbers<[2], [1], [1], [2], [0, 0, 0, 1, 1, 2], [0], [0]>} : vector<2x8x8xf32>, vector<2x8x8xf32>, vector<2x8x8xf32> -> vector<2x8x8xf32>
    "tpu.trace_stop"() : () -> ()
    %c48 = arith.constant 48 : index
    %c0_24 = arith.constant 0 : index
    %65 = vector.load %arg2[%c48, %c0_24] : memref<168x128xf32, #tpu.memory_space<vmem>>, vector<8x32xf32>
    %66 = vector.shape_cast %64 : vector<2x8x8xf32> to vector<16x8xf32>
    %cst_25 = arith.constant dense<0.000000e+00> : vector<16x32xf32>
    %67 = tpu.matmul %66, %65, %cst_25 {dimension_numbers = #tpu.dot_dimension_numbers<[1], [0], [0], [1], [0, 0, 1, 1], [], []>} : vector<16x8xf32>, vector<8x32xf32>, vector<16x32xf32> -> vector<16x32xf32>
    %68 = arith.addf %48, %67 : vector<16x32xf32>
    %69 = vector.extract_strided_slice %6 {offsets = [0, 0, 24], sizes = [2, 8, 8], strides = [1, 1, 1]} : vector<2x8x96xf32> to vector<2x8x8xf32>
    %70 = vector.extract_strided_slice %6 {offsets = [0, 0, 56], sizes = [2, 8, 8], strides = [1, 1, 1]} : vector<2x8x96xf32> to vector<2x8x8xf32>
    %71 = vector.extract_strided_slice %6 {offsets = [0, 0, 88], sizes = [2, 8, 8], strides = [1, 1, 1]} : vector<2x8x96xf32> to vector<2x8x8xf32>
    "tpu.trace_start"() <{level = 10 : i32, message = "bqd,bkd->bqk"}> : () -> ()
    %cst_26 = arith.constant dense<0.000000e+00> : vector<2x8x8xf32>
    %72 = tpu.matmul %69, %70, %cst_26 {dimension_numbers = #tpu.dot_dimension_numbers<[2], [2], [1], [1], [0, 0, 0, 1, 1, 1], [0], [0]>} : vector<2x8x8xf32>, vector<2x8x8xf32>, vector<2x8x8xf32> -> vector<2x8x8xf32>
    "tpu.trace_stop"() : () -> ()
    %73 = arith.mulf %72, %7 : vector<2x8x8xf32>
    %cst_27 = arith.constant dense<0xFF800000> : vector<2x8xf32>
    %74 = vector.multi_reduction <maximumf>, %73, %cst_27 [2] : vector<2x8x8xf32> to vector<2x8xf32>
    %75 = vector.shape_cast %74 : vector<2x8xf32> to vector<2x8x1xf32>
    %76 = vector.broadcast %75 : vector<2x8x1xf32> to vector<2x8x8xf32>
    %77 = arith.subf %73, %76 : vector<2x8x8xf32>
    %78 = math.exp %77 : vector<2x8x8xf32>
    %cst_28 = arith.constant dense<0.000000e+00> : vector<2x8xf32>
    %79 = vector.multi_reduction <add>, %78, %cst_28 [2] : vector<2x8x8xf32> to vector<2x8xf32>
    %80 = vector.shape_cast %79 : vector<2x8xf32> to vector<2x8x1xf32>
    %81 = tpu.reciprocal %80 {approx = true} : vector<2x8x1xf32> -> vector<2x8x1xf32>
    %82 = vector.broadcast %81 : vector<2x8x1xf32> to vector<2x8x8xf32>
    %83 = arith.mulf %78, %82 : vector<2x8x8xf32>
    "tpu.trace_start"() <{level = 10 : i32, message = "bqk,bkd->bqd"}> : () -> ()
    %cst_29 = arith.constant dense<0.000000e+00> : vector<2x8x8xf32>
    %84 = tpu.matmul %83, %71, %cst_29 {dimension_numbers = #tpu.dot_dimension_numbers<[2], [1], [1], [2], [0, 0, 0, 1, 1, 2], [0], [0]>} : vector<2x8x8xf32>, vector<2x8x8xf32>, vector<2x8x8xf32> -> vector<2x8x8xf32>
    "tpu.trace_stop"() : () -> ()
    %c56 = arith.constant 56 : index
    %c0_30 = arith.constant 0 : index
    %85 = vector.load %arg2[%c56, %c0_30] : memref<168x128xf32, #tpu.memory_space<vmem>>, vector<8x32xf32>
    %86 = vector.shape_cast %84 : vector<2x8x8xf32> to vector<16x8xf32>
    %cst_31 = arith.constant dense<0.000000e+00> : vector<16x32xf32>
    %87 = tpu.matmul %86, %85, %cst_31 {dimension_numbers = #tpu.dot_dimension_numbers<[1], [0], [0], [1], [0, 0, 1, 1], [], []>} : vector<16x8xf32>, vector<8x32xf32>, vector<16x32xf32> -> vector<16x32xf32>
    %88 = arith.addf %68, %87 : vector<16x32xf32>
    %c161 = arith.constant 161 : index
    %c0_32 = arith.constant 0 : index
    %89 = vector.load %arg2[%c161, %c0_32] : memref<168x128xf32, #tpu.memory_space<vmem>>, vector<1x32xf32>
    %90 = vector.broadcast %89 : vector<1x32xf32> to vector<16x32xf32>
    %91 = arith.addf %88, %90 : vector<16x32xf32>
    %92 = arith.addf %91, %0 : vector<16x32xf32>
    %c162 = arith.constant 162 : index
    %c0_33 = arith.constant 0 : index
    %93 = vector.load %arg2[%c162, %c0_33] : memref<168x128xf32, #tpu.memory_space<vmem>>, vector<1x32xf32>
    %c163 = arith.constant 163 : index
    %c0_34 = arith.constant 0 : index
    %94 = vector.load %arg2[%c163, %c0_34] : memref<168x128xf32, #tpu.memory_space<vmem>>, vector<1x32xf32>
    %cst_35 = arith.constant dense<0.000000e+00> : vector<16xf32>
    %95 = vector.multi_reduction <add>, %92, %cst_35 [1] : vector<16x32xf32> to vector<16xf32>
    %96 = vector.shape_cast %95 : vector<16xf32> to vector<16x1xf32>
    %cst_36 = arith.constant 3.200000e+01 : f32
    %97 = vector.broadcast %cst_36 : f32 to vector<16x1xf32>
    %98 = arith.divf %96, %97 : vector<16x1xf32>
    %99 = vector.broadcast %98 : vector<16x1xf32> to vector<16x32xf32>
    %100 = arith.subf %92, %99 : vector<16x32xf32>
    %101 = arith.mulf %100, %100 : vector<16x32xf32>
    %cst_37 = arith.constant dense<0.000000e+00> : vector<16xf32>
    %102 = vector.multi_reduction <add>, %101, %cst_37 [1] : vector<16x32xf32> to vector<16xf32>
    %103 = vector.shape_cast %102 : vector<16xf32> to vector<16x1xf32>
    %cst_38 = arith.constant 3.200000e+01 : f32
    %104 = vector.broadcast %cst_38 : f32 to vector<16x1xf32>
    %105 = arith.divf %103, %104 : vector<16x1xf32>
    %106 = vector.broadcast %98 : vector<16x1xf32> to vector<16x32xf32>
    %107 = arith.subf %92, %106 : vector<16x32xf32>
    %cst_39 = arith.constant 9.99999996E-13 : f32
    %108 = vector.broadcast %cst_39 : f32 to vector<16x1xf32>
    %109 = arith.addf %105, %108 : vector<16x1xf32>
    %110 = math.rsqrt %109 : vector<16x1xf32>
    %111 = vector.broadcast %110 : vector<16x1xf32> to vector<16x32xf32>
    %112 = arith.mulf %107, %111 : vector<16x32xf32>
    %113 = vector.broadcast %93 : vector<1x32xf32> to vector<16x32xf32>
    %114 = arith.mulf %113, %112 : vector<16x32xf32>
    %115 = vector.broadcast %94 : vector<1x32xf32> to vector<16x32xf32>
    %116 = arith.addf %114, %115 : vector<16x32xf32>
    %c64 = arith.constant 64 : index
    %c0_40 = arith.constant 0 : index
    %117 = vector.load %arg2[%c64, %c0_40] : memref<168x128xf32, #tpu.memory_space<vmem>>, vector<32x64xf32>
    %c164 = arith.constant 164 : index
    %c0_41 = arith.constant 0 : index
    %118 = vector.load %arg2[%c164, %c0_41] : memref<168x128xf32, #tpu.memory_space<vmem>>, vector<1x64xf32>
    %c96 = arith.constant 96 : index
    %c0_42 = arith.constant 0 : index
    %119 = vector.load %arg2[%c96, %c0_42] : memref<168x128xf32, #tpu.memory_space<vmem>>, vector<64x32xf32>
    %c165 = arith.constant 165 : index
    %c0_43 = arith.constant 0 : index
    %120 = vector.load %arg2[%c165, %c0_43] : memref<168x128xf32, #tpu.memory_space<vmem>>, vector<1x32xf32>
    %cst_44 = arith.constant dense<0.000000e+00> : vector<16x64xf32>
    %121 = tpu.matmul %116, %117, %cst_44 {dimension_numbers = #tpu.dot_dimension_numbers<[1], [0], [0], [1], [0, 0, 1, 1], [], []>} : vector<16x32xf32>, vector<32x64xf32>, vector<16x64xf32> -> vector<16x64xf32>
    %122 = vector.broadcast %118 : vector<1x64xf32> to vector<16x64xf32>
    %123 = arith.addf %121, %122 : vector<16x64xf32>
    %cst_45 = arith.constant 0.000000e+00 : f32
    %124 = vector.broadcast %cst_45 : f32 to vector<16x64xf32>
    %125 = arith.maximumf %123, %124 : vector<16x64xf32>
    %cst_46 = arith.constant dense<0.000000e+00> : vector<16x32xf32>
    %126 = tpu.matmul %125, %119, %cst_46 {dimension_numbers = #tpu.dot_dimension_numbers<[1], [0], [0], [1], [0, 0, 1, 1], [], []>} : vector<16x64xf32>, vector<64x32xf32>, vector<16x32xf32> -> vector<16x32xf32>
    %127 = vector.broadcast %120 : vector<1x32xf32> to vector<16x32xf32>
    %128 = arith.addf %126, %127 : vector<16x32xf32>
    %129 = arith.addf %128, %116 : vector<16x32xf32>
    %c166 = arith.constant 166 : index
    %c0_47 = arith.constant 0 : index
    %130 = vector.load %arg2[%c166, %c0_47] : memref<168x128xf32, #tpu.memory_space<vmem>>, vector<1x32xf32>
    %c167 = arith.constant 167 : index
    %c0_48 = arith.constant 0 : index
    %131 = vector.load %arg2[%c167, %c0_48] : memref<168x128xf32, #tpu.memory_space<vmem>>, vector<1x32xf32>
    %cst_49 = arith.constant dense<0.000000e+00> : vector<16xf32>
    %132 = vector.multi_reduction <add>, %129, %cst_49 [1] : vector<16x32xf32> to vector<16xf32>
    %133 = vector.shape_cast %132 : vector<16xf32> to vector<16x1xf32>
    %cst_50 = arith.constant 3.200000e+01 : f32
    %134 = vector.broadcast %cst_50 : f32 to vector<16x1xf32>
    %135 = arith.divf %133, %134 : vector<16x1xf32>
    %136 = vector.broadcast %135 : vector<16x1xf32> to vector<16x32xf32>
    %137 = arith.subf %129, %136 : vector<16x32xf32>
    %138 = arith.mulf %137, %137 : vector<16x32xf32>
    %cst_51 = arith.constant dense<0.000000e+00> : vector<16xf32>
    %139 = vector.multi_reduction <add>, %138, %cst_51 [1] : vector<16x32xf32> to vector<16xf32>
    %140 = vector.shape_cast %139 : vector<16xf32> to vector<16x1xf32>
    %cst_52 = arith.constant 3.200000e+01 : f32
    %141 = vector.broadcast %cst_52 : f32 to vector<16x1xf32>
    %142 = arith.divf %140, %141 : vector<16x1xf32>
    %143 = vector.broadcast %135 : vector<16x1xf32> to vector<16x32xf32>
    %144 = arith.subf %129, %143 : vector<16x32xf32>
    %cst_53 = arith.constant 9.99999996E-13 : f32
    %145 = vector.broadcast %cst_53 : f32 to vector<16x1xf32>
    %146 = arith.addf %142, %145 : vector<16x1xf32>
    %147 = math.rsqrt %146 : vector<16x1xf32>
    %148 = vector.broadcast %147 : vector<16x1xf32> to vector<16x32xf32>
    %149 = arith.mulf %144, %148 : vector<16x32xf32>
    %150 = vector.broadcast %130 : vector<1x32xf32> to vector<16x32xf32>
    %151 = arith.mulf %150, %149 : vector<16x32xf32>
    %152 = vector.broadcast %131 : vector<1x32xf32> to vector<16x32xf32>
    %153 = arith.addf %151, %152 : vector<16x32xf32>
    %c0_54 = arith.constant 0 : index
    %c0_55 = arith.constant 0 : index
    %154 = vector.load %arg3[%c0_54, %c0_55] : memref<16x32xf32, #tpu.memory_space<vmem>>, vector<16x32xf32>
    tpu.vector_store %arg3[%c0_54, %c0_55], %153 {strides = array<i32>} : memref<16x32xf32, #tpu.memory_space<vmem>>, vector<16x32xf32>,
    return
  }
}

</mosaic_0001>

<bundles_post_ra>
// kernel: encoder_layer.1
= control target key start
LH: loop header
LB: loop body
LE: loop exit
PB: predicated region body
PF: predicated region fallthrough
CT: control target
= control target key end

     0   :  { %8 = vsyncpa [#allocation3], 0  ;;  %s2740_s0 = inlined_call_operand.hbm [shape: f32[16,32], index: 0, kind: input, shape index: {}]   ;;  %s2741_s1 = inlined_call_operand.hbm [shape: f32[2,8,8], index: 1, kind: input, shape index: {}]   ;;  %s2742_s2 = inlined_call_operand.hbm [shape: f32[168,128], index: 2, kind: input, shape index: {}]   ;;  %s2743_s3 = inlined_call_operand.hbm [shape: f32[16,32], index: 3, kind: output, shape index: {}]  }
   0x1   :  { %9 = vsyncpa [#allocation6], 0 }
   0x2   :  { %10 = vsyncpa [#allocation4], 0  ;;  %s2507_s12 = smov [#allocation5]   ;;  %s2508_s14 = smov [#allocation2]  }
   0x3   :  { %s28_s13 = sshll.u32 %s2507_s12, 4  ;;  %s16_s15 = sshll.u32 %s2508_s14, 4  ;;  %s29_s13 = int_to_ptr.vmem [resolvable:$true] %s28_s13  ;;  %s17_s15 = int_to_ptr.vmem [resolvable:$true] %s16_s15 }
   0x4   :  { %s2429_s16 = scalar_lea.vmem %s29_s13, 256  ;;  %p2434_p1 = scmp.lt.s32.totalorder %s29_s13, %s29_s13 }
   0x5   :  { %p2430_p0 = scmp.ne.s32.totalorder %s29_s13, %s2429_s16  ;;  %p2435_p2 = scmp.lt.s32.totalorder %s2429_s16, %s2429_s16 }
   0x7   :  { %p2436_p3 = por %p2435_p2, %p2434_p1 }
   0x9   :  { %p2437_p4 = pnand %p2436_p3, %p2430_p0 }
   0xb   :  { %2440 = shalt.err (!%p2437_p4)
}
   0xc   :  { %s2509_s17 = smov 128   ;;  %s2510_s18 = smov 8  }
   0xd   :  { %34 = dma.hbm_to_vmem [thread:$0]  %s2741_s1, 256, %s29_s13, [#allocation6], %s2509_s17, %s2509_s17, %s2510_s18  }
   0xe   :  { %s2449_s21 = scalar_lea.vmem %s17_s15, 256  ;;  %p2454_p6 = scmp.lt.s32.totalorder %s17_s15, %s17_s15 }
   0xf   :  { %p2450_p5 = scmp.ne.s32.totalorder %s17_s15, %s2449_s21  ;;  %p2455_p7 = scmp.lt.s32.totalorder %s2449_s21, %s2449_s21 }
  0x11   :  { %p2456_p8 = por %p2455_p7, %p2454_p6 }
  0x13   :  { %p2457_p9 = pnand %p2456_p8, %p2450_p5 }
  0x15   :  { %2460 = shalt.err (!%p2457_p9)
}
  0x16   :  { %22 = dma.hbm_to_vmem [thread:$0]  %s2740_s0, 256, %s17_s15, [#allocation3], %s2509_s17, %s2509_s17, %s2510_s18  }
  0x17   :  { %s2511_s24 = smov [#allocation7]  }
  0x18   :  { %s40_s25 = sshll.u32 %s2511_s24, 4  ;;  %s41_s25 = int_to_ptr.vmem [resolvable:$true] %s40_s25 }
  0x19   :  { %s2469_s26 = scalar_lea.vmem %s41_s25, 2688  ;;  %p2474_p11 = scmp.lt.s32.totalorder %s41_s25, %s41_s25 }
  0x1a   :  { %p2470_p10 = scmp.ne.s32.totalorder %s41_s25, %s2469_s26  ;;  %p2475_p12 = scmp.lt.s32.totalorder %s2469_s26, %s2469_s26 }
  0x1c   :  { %p2476_p13 = por %p2475_p12, %p2474_p11 }
  0x1e   :  { %p2477_p0 = pnand %p2476_p13, %p2470_p10 }
  0x20   :  { %2480 = shalt.err (!%p2477_p0)
}
  0x21   :  { %46 = dma.hbm_to_vmem [thread:$0]  %s2742_s2, 2688, %s41_s25, [#allocation6], %s2509_s17, %s2509_s17, %s2510_s18  }
  0x22   :  { %2501 = dma.done.wait [#allocation3], 256  }
  0x23   :  { %2502 = vsyncadd [#allocation3], 4294967040 }
  0x24   :  { %2503 = dma.done.wait [#allocation6], 2944  }
  0x25   :  { %2504 = vsyncadd [#allocation6], 4294964352  ;;  %vm67_vm0 = vcmask 261120   ;;  %v61_v0 = vld [vmem:[#allocation7 + $0x18] sm:$0xff]  ;;  %v60_v1 = vld [vmem:[#allocation7 + $0x10] sm:$0xff]  ;;  %v2512_v6 = vmov 0.0  }
  0x26   :  { %2221 = vmatprep.subr.mxu0 %v61_v0  ;;  %v2564_v2 = vld [vmem:[#allocation2] sm:$0xff]  ;;  %v59_v3 = vld [vmem:[#allocation7 + $0x8] sm:$0xff]  ;;  %2237 = vmatprep.subr.mxu1 %v2512_v6  ;;  %vm2513_vm1 = vmmov 0   ;;  %s2514_s0 = smov 96   ;;  %vm154_vm2 = vcmask 64512   ;;  %v2596_v14 = vld [vmem:[#allocation5] sm:$0xff] }
  0x27   :  { %2222 = vmatpush3.msra.mxu0 %v61_v0  ;;  %2229 = vmatprep.mubr.msk.f32.mxu0 %vm67_vm0, %v2564_v2  ;;  %v58_v4 = vld [vmem:[#allocation7] sm:$0xff]  ;;  %v2568_v5 = vld [vmem:[#allocation2 + $0x8] sm:$0xff]  ;;  %v2599_v18 = vld [vmem:[#allocation5 + $0x8] sm:$0xff]  ;;  %s2515_s2 = smov 64   ;;  %s2516_s28 = smov 120   ;;  %vm1965_vm3 = vcmask 523264  }
  0x28   :  { %2223 = vmatprep.subr.mxu0 %v60_v1  ;;  %2239 = vmatprep.mubr.msk.f32.mxu1 %vm2513_vm1, %v2512_v6  ;;  %v2109_v8 = vld [vmem:[#allocation7 + $0xa0] ss:$0 sm:$0xff]  ;;  %s2517_s29 = smov 88   ;;  %s2518_s30 = smov 56  }
  0x29   :  { %2224 = vmatpush3.msra.mxu0 %v60_v1  ;;  %s2519_s4 = smov 112   ;;  %s2520_s5 = smov 80  }
  0x2a   :  { %2225 = vmatprep.subr.mxu0 %v59_v3  ;;  %s2521_s6 = smov 48   ;;  %s2522_s7 = smov 72  }
  0x2b   :  { %2226 = vmatpush3.msra.mxu0 %v59_v3  ;;  %s2523_s8 = smov 104   ;;  %s2524_s9 = smov 40  }
  0x2c   :  { %2227 = vmatprep.subr.mxu0 %v58_v4  ;;  %s2525_s10 = smov [#allocation8]  }
  0x2d   :  { %2228 = vmatpush3.msra.mxu0 %v58_v4  ;;  %s2096_s11 = sshll.u32 %s2525_s10, 4  ;;  %s2097_s11 = int_to_ptr.vmem [resolvable:$true] %s2096_s11 }
  0x2e   :  { %2230 = vmatmul.mubr.msk.f32.vlgmr.msra.gmra.mxu0 %vm67_vm0, %v2568_v5  ;;  %2232 = vmatprep.subr.mxu0 %v2512_v6  ;;  %s2481_s12 = scalar_lea.vmem %s2097_s11, 256  ;;  %p2486_p2 = scmp.lt.s32.totalorder %s2097_s11, %s2097_s11 }
  0x2f   :  { %2234 = vmatprep.mubr.msk.f32.mxu0 %vm2513_vm1, %v2512_v6  ;;  %p2482_p1 = scmp.ne.s32.totalorder %s2097_s11, %s2481_s12  ;;  %p2487_p3 = scmp.lt.s32.totalorder %s2481_s12, %s2481_s12 }
  0x31   :  { %p2488_p4 = por %p2487_p3, %p2486_p2 }
  0x33   :  { %p2489_p5 = pnand %p2488_p4, %p2482_p1 }
  0xee   :  { %v2231_v7 = vpop.f32.mrf.mxu0 }
  0xef   :  { %v2581_v11 = vadd.f32 %v2231_v7, %v2109_v8 }
  0xf0   :  { %v140_v9 = vpop.f32.mrf.mxu0 }
  0xf1   :  { %v2578_v10 = vadd.f32 %v2109_v8, %v140_v9  ;;  %v482_v8 = vld [vmem:[#allocation7 + $0x20] sm:$0xff] }
  0xf3   :  { %152 = vrot.lane.b32.xlu0 %v2578_v10, %s2514_s0 }
  0xf7   :  { %230 = vrot.lane.b32.xlu0 %v2581_v11, %s2514_s0 }
 0x165   :  { %v153_v12 = vpop.permute.xlu0 %152 }
 0x166   :  { %2233 = vmatpush3.xpose.msk.msra.mxu0 %vm154_vm2, %v153_v12 }
 0x167   :  { %2242 = vmatprep.subr.mxu0 %v2512_v6 }
 0x169   :  { %2235 = vmatmul.mubr.msk.f32.vlgmr.msra.gmra.mxu0 %vm154_vm2, %v2578_v10  ;;  %v231_v13 = vpop.permute.xlu0 %230 }
 0x16a   :  { %2238 = vmatpush3.xpose.msk.msra.mxu1 %vm154_vm2, %v231_v13  ;;  %2244 = vmatprep.mubr.msk.f32.mxu0 %vm2513_vm1, %v2512_v6 }
 0x16b   :  { %2247 = vmatprep.subr.mxu1 %v2512_v6 }
 0x16d   :  { %2240 = vmatmul.mubr.msk.f32.vlgmr.msra.gmra.mxu1 %vm154_vm2, %v2581_v11 }
 0x16e   :  { %2249 = vmatprep.mubr.msk.f32.mxu1 %vm2513_vm1, %v2512_v6 }
 0x229   :  { %v225_v15 = vpop.f32.mrf.mxu0 }
 0x22a   :  { %v306_v16 = vmul.f32 %v225_v15, %v2596_v14 }
 0x22b   :  { %v2236_v17 = vpop.f32.mrf.mxu0 }
 0x22c   :  { %v308_v19 = vsel %vm154_vm2, %v306_v16, -inf }
 0x22d   :  { %309 = vmax.xlane.f32.xlu1 %v308_v19  ;;  %v302_v20 = vpop.f32.mrf.mxu1 }
 0x22e   :  { %v307_v21 = vmul.f32 %v302_v20, %v2599_v18 }
 0x22f   :  { %v2241_v22 = vpop.f32.mrf.mxu1 }
 0x230   :  { %v311_v23 = vsel %vm154_vm2, %v307_v21, -inf }
 0x231   :  { %312 = vmax.xlane.f32.xlu1 %v311_v23  ;;  %v815_v23 = vld [vmem:[#allocation7 + $0x28] sm:$0xff] }
 0x2b6   :  { %v310_v24 = vpop.xlane.xlu1 %309 }
 0x2b7   :  { %v314_v25 = vsub.f32 %v306_v16, %v310_v24 }
 0x2b9   :  { %v316_v26 = vmul.f32 1.442695, %v314_v25 }
 0x2ba   :  { %v313_v27 = vpop.xlane.xlu1 %312 }
 0x2bb   :  { %2381 = vpow2.f32 %v316_v26  ;;  %v315_v28 = vsub.f32 %v307_v21, %v313_v27 }
 0x2bd   :  { %v318_v29 = vmul.f32 1.442695, %v315_v28 }
 0x2bf   :  { %2383 = vpow2.f32 %v318_v29 }
 0x2c8   :  { %v2382_v30 = vpop.eup %2381 }
 0x2c9   :  { %v320_v31 = vsel %vm154_vm2, %v2382_v30, 0.0 }
 0x2ca   :  { %321 = vadd.xlane.f32.xlu0 %v320_v31 }
 0x2cc   :  { %v2384_v32 = vpop.eup %2383 }
 0x2cd   :  { %v323_v33 = vsel %vm154_vm2, %v2384_v32, 0.0 }
 0x2ce   :  { %324 = vadd.xlane.f32.xlu1 %v323_v33 }
 0x2df   :  { %330 = vrot.lane.b32.xlu1 %v2578_v10, %s2515_s2 }
 0x2e0   :  { %483 = vrot.lane.b32.xlu0 %v2578_v10, %s2516_s28 }
 0x2e3   :  { %406 = vrot.lane.b32.xlu1 %v2581_v11, %s2515_s2 }
 0x2e7   :  { %485 = vrot.lane.b32.xlu1 %v2578_v10, %s2517_s29 }
 0x2eb   :  { %563 = vrot.lane.b32.xlu1 %v2581_v11, %s2517_s29 }
 0x2ef   :  { %561 = vrot.lane.b32.xlu1 %v2581_v11, %s2516_s28 }
 0x353   :  { %v322_v34 = vpop.xlane.xlu0 %321 }
 0x354   :  { %2385 = vrcp.f32 %v322_v34 }
 0x357   :  { %v325_v35 = vpop.xlane.xlu1 %324  ;;  %v484_v43 = vpop.permute.xlu0 %483 }
 0x358   :  { %2387 = vrcp.f32 %v325_v35 }
 0x35b   :  { %v331_v36 = vpop.permute.xlu1 %330 }
 0x35c   :  { %2243 = vmatpush3.msra.mxu0 %v331_v36 }
 0x35d   :  { %2252 = vmatprep.subr.mxu0 %v2512_v6 }
 0x35f   :  { %v407_v37 = vpop.permute.xlu1 %406 }
 0x360   :  { %2248 = vmatpush3.msra.mxu1 %v407_v37 }
 0x361   :  { %v2386_v38 = vpop.eup %2385  ;;  %2257 = vmatprep.subr.mxu1 %v2512_v6 }
 0x362   :  { %v328_v39 = vmul.f32 %v2386_v38, %v2382_v30 }
 0x363   :  { %v486_v40 = vpop.permute.xlu1 %485 }
 0x364   :  { %2245 = vmatmul.mubr.msk.f32.vlgmr.msra.gmra.mxu0 %vm154_vm2, %v328_v39 }
 0x365   :  { %v2388_v41 = vpop.eup %2387  ;;  %2253 = vmatpush3.xpose.msk.msra.mxu0 %vm154_vm2, %v486_v40  ;;  %2254 = vmatprep.mubr.msk.f32.mxu0 %vm2513_vm1, %v2512_v6 }
 0x366   :  { %v329_v42 = vmul.f32 %v2388_v41, %v2384_v32  ;;  %2262 = vmatprep.subr.mxu0 %v2512_v6 }
 0x367   :  { %v564_v44 = vpop.permute.xlu1 %563 }
 0x368   :  { %2250 = vmatmul.mubr.msk.f32.vlgmr.msra.gmra.mxu1 %vm154_vm2, %v329_v42  ;;  %2255 = vmatmul.mubr.msk.f32.vlgmr.msra.gmra.mxu0 %vm154_vm2, %v484_v43 }
 0x369   :  { %2258 = vmatpush3.xpose.msk.msra.mxu1 %vm154_vm2, %v564_v44  ;;  %2259 = vmatprep.mubr.msk.f32.mxu1 %vm2513_vm1, %v2512_v6 }
 0x36a   :  { %2267 = vmatprep.subr.mxu1 %v2512_v6  ;;  %2264 = vmatprep.mubr.msk.f32.mxu0 %vm2513_vm1, %v2512_v6 }
 0x36b   :  { %v562_v45 = vpop.permute.xlu1 %561 }
 0x36c   :  { %2260 = vmatmul.mubr.msk.f32.vlgmr.msra.gmra.mxu1 %vm154_vm2, %v562_v45 }
 0x36d   :  { %2269 = vmatprep.mubr.msk.f32.mxu1 %vm2513_vm1, %v2512_v6 }
 0x424   :  { %v402_v46 = vpop.f32.mrf.mxu0 }
 0x426   :  { %v2246_v47 = vpop.f32.mrf.mxu0 }
 0x428   :  { %v478_v48 = vpop.f32.mrf.mxu1  ;;  %v557_v49 = vpop.f32.mrf.mxu0 }
 0x429   :  { %v639_v50 = vmul.f32 %v557_v49, %v2596_v14 }
 0x42a   :  { %v2251_v51 = vpop.f32.mrf.mxu1  ;;  %v2256_v52 = vpop.f32.mrf.mxu0 }
 0x42b   :  { %v641_v53 = vsel %vm154_vm2, %v639_v50, -inf }
 0x42c   :  { %v635_v54 = vpop.f32.mrf.mxu1  ;;  %642 = vmax.xlane.f32.xlu1 %v641_v53 }
 0x42d   :  { %v640_v55 = vmul.f32 %v635_v54, %v2599_v18 }
 0x42e   :  { %v2261_v56 = vpop.f32.mrf.mxu1 }
 0x42f   :  { %v644_v57 = vsel %vm154_vm2, %v640_v55, -inf }
 0x430   :  { %645 = vmax.xlane.f32.xlu0 %v644_v57 }
 0x446   :  { %739 = vrot.lane.b32.xlu0 %v2581_v11, %s2518_s30 }
 0x44a   :  { %978 = vrot.lane.b32.xlu0 %v2578_v10, %s2519_s4 }
 0x4b5   :  { %v643_v58 = vpop.xlane.xlu1 %642 }
 0x4b6   :  { %v647_v59 = vsub.f32 %v639_v50, %v643_v58 }
 0x4b8   :  { %v649_v62 = vmul.f32 1.442695, %v647_v59 }
 0x4b9   :  { %v646_v60 = vpop.xlane.xlu0 %645 }
 0x4ba   :  { %v648_v61 = vsub.f32 %v640_v55, %v646_v60 }
 0x4bc   :  { %v651_v63 = vmul.f32 1.442695, %v648_v61  ;;  %v1310_v61 = vld [vmem:[#allocation7 + $0x30] sm:$0xff] }
 0x4bd   :  { %v740_v0 = vpop.permute.xlu0 %739 }
 0x4be   :  { %2389 = vpow2.f32 %v651_v63  ;;  %2268 = vmatpush3.msra.mxu1 %v740_v0 }
 0x4bf   :  { %2391 = vpow2.f32 %v649_v62  ;;  %2277 = vmatprep.subr.mxu1 %v482_v8 }
 0x4c1   :  { %v979_v31 = vpop.permute.xlu0 %978 }
 0x4cb   :  { %v2390_v1 = vpop.eup %2389 }
 0x4cc   :  { %v656_v3 = vsel %vm154_vm2, %v2390_v1, 0.0  ;;  %v2392_v4 = vpop.eup %2391 }
 0x4cd   :  { %657 = vadd.xlane.f32.xlu1 %v656_v3  ;;  %v653_v7 = vsel %vm154_vm2, %v2392_v4, 0.0 }
 0x4d1   :  { %654 = vadd.xlane.f32.xlu1 %v653_v7 }
 0x4e2   :  { %663 = vrot.lane.b32.xlu1 %v2578_v10, %s2518_s30 }
 0x4e6   :  { %980 = vrot.lane.b32.xlu1 %v2578_v10, %s2520_s5 }
 0x4ea   :  { %1058 = vrot.lane.b32.xlu1 %v2581_v11, %s2520_s5 }
 0x4ee   :  { %1056 = vrot.lane.b32.xlu1 %v2581_v11, %s2519_s4 }
 0x556   :  { %v658_v9 = vpop.xlane.xlu1 %657 }
 0x557   :  { %2393 = vrcp.f32 %v658_v9 }
 0x55a   :  { %v655_v12 = vpop.xlane.xlu1 %654 }
 0x55b   :  { %2395 = vrcp.f32 %v655_v12 }
 0x55e   :  { %v664_v13 = vpop.permute.xlu1 %663 }
 0x55f   :  { %2263 = vmatpush3.msra.mxu0 %v664_v13 }
 0x560   :  { %2272 = vmatprep.subr.mxu0 %v815_v23 }
 0x562   :  { %v981_v15 = vpop.permute.xlu1 %980 }
 0x564   :  { %v2394_v16 = vpop.eup %2393 }
 0x565   :  { %v662_v17 = vmul.f32 %v2394_v16, %v2390_v1 }
 0x566   :  { %v1059_v20 = vpop.permute.xlu1 %1058 }
 0x567   :  { %2270 = vmatmul.mubr.msk.f32.vlgmr.msra.gmra.mxu1 %vm154_vm2, %v662_v17 }
 0x568   :  { %v2396_v19 = vpop.eup %2395  ;;  %2279 = vmatprep.mubr.msk.f32.mxu1 %vm154_vm2, %v402_v46  ;;  %2278 = vmatpush3.msra.mxu1 %v482_v8 }
 0x569   :  { %2287 = vmatprep.subr.mxu1 %v2512_v6  ;;  %v661_v21 = vmul.f32 %v2396_v19, %v2392_v4 }
 0x56a   :  { %v1057_v22 = vpop.permute.xlu1 %1056 }
 0x56b   :  { %2265 = vmatmul.mubr.msk.f32.vlgmr.msra.gmra.mxu0 %vm154_vm2, %v661_v21  ;;  %2280 = vmatmul.mubr.msk.f32.vlgmr.msra.gmra.mxu1 %vm154_vm2, %v478_v48 }
 0x56c   :  { %2288 = vmatpush3.xpose.msk.msra.mxu1 %vm154_vm2, %v1059_v20  ;;  %2289 = vmatprep.mubr.msk.f32.mxu1 %vm2513_vm1, %v2512_v6 }
 0x56d   :  { %2297 = vmatprep.subr.mxu1 %v2512_v6  ;;  %2273 = vmatpush3.msra.mxu0 %v815_v23 }
 0x56e   :  { %2282 = vmatprep.subr.mxu0 %v2512_v6 }
 0x56f   :  { %2290 = vmatmul.mubr.msk.f32.vlgmr.msra.gmra.mxu1 %vm154_vm2, %v1057_v22 }
 0x570   :  { %2299 = vmatprep.mubr.msk.f32.mxu1 %vm2513_vm1, %v2512_v6 }
 0x627   :  { %v811_v24 = vpop.f32.mrf.mxu1 }
 0x629   :  { %v2271_v25 = vpop.f32.mrf.mxu1 }
 0x62b   :  { %v735_v26 = vpop.f32.mrf.mxu0  ;;  %v2655_v27 = vpop.f32.mrf.mxu1 }
 0x62c   :  { %2274 = vmatprep.mubr.msk.f32.mxu0 %vm154_vm2, %v735_v26 }
 0x62d   :  { %v2266_v28 = vpop.f32.mrf.mxu0  ;;  %2275 = vmatmul.mubr.msk.f32.vlgmr.msra.gmra.mxu0 %vm154_vm2, %v811_v24  ;;  %v2659_v29 = vpop.f32.mrf.mxu1 }
 0x62e   :  { %2283 = vmatpush3.xpose.msk.msra.mxu0 %vm154_vm2, %v981_v15  ;;  %2284 = vmatprep.mubr.msk.f32.mxu0 %vm2513_vm1, %v2512_v6 }
 0x62f   :  { %v1130_v30 = vpop.f32.mrf.mxu1  ;;  %2292 = vmatprep.subr.mxu0 %v2512_v6 }
 0x630   :  { %v1135_v32 = vmul.f32 %v1130_v30, %v2599_v18 }
 0x631   :  { %2285 = vmatmul.mubr.msk.f32.vlgmr.msra.gmra.mxu0 %vm154_vm2, %v979_v31  ;;  %v2291_v33 = vpop.f32.mrf.mxu1 }
 0x632   :  { %v1139_v34 = vsel %vm154_vm2, %v1135_v32, -inf  ;;  %2294 = vmatprep.mubr.msk.f32.mxu0 %vm2513_vm1, %v2512_v6 }
 0x633   :  { %1140 = vmax.xlane.f32.xlu1 %v1139_v34 }
 0x644   :  { %1158 = vrot.lane.b32.xlu1 %v2578_v10, %s2521_s6 }
 0x648   :  { %1396 = vrot.lane.b32.xlu1 %v2578_v10, %s2522_s7 }
 0x64c   :  { %1474 = vrot.lane.b32.xlu1 %v2581_v11, %s2522_s7 }
 0x650   :  { %1472 = vrot.lane.b32.xlu1 %v2581_v11, %s2523_s8 }
 0x6bc   :  { %v1141_v35 = vpop.xlane.xlu1 %1140 }
 0x6bd   :  { %v1143_v37 = vsub.f32 %v1135_v32, %v1141_v35 }
 0x6bf   :  { %v1146_v38 = vmul.f32 1.442695, %v1143_v37 }
 0x6c0   :  { %v1159_v36 = vpop.permute.xlu1 %1158 }
 0x6c1   :  { %2293 = vmatpush3.msra.mxu0 %v1159_v36  ;;  %2397 = vpow2.f32 %v1146_v38  ;;  %v1726_v36 = vld [vmem:[#allocation7 + $0x38] sm:$0xff] }
 0x6c2   :  { %2302 = vmatprep.subr.mxu0 %v1310_v61 }
 0x6c4   :  { %v1397_v57 = vpop.permute.xlu1 %1396 }
 0x6c8   :  { %v1475_v7 = vpop.permute.xlu1 %1474 }
 0x6cc   :  { %v1473_v12 = vpop.permute.xlu1 %1472 }
 0x6ce   :  { %v2398_v45 = vpop.eup %2397 }
 0x6cf   :  { %v1151_v46 = vsel %vm154_vm2, %v2398_v45, 0.0 }
 0x6ed   :  { %v2674_v39 = vpop.f32.mrf.mxu0 }
 0x6ee   :  { %v975_v19 = vadd.f32 %v2655_v27, %v2674_v39 }
 0x6ef   :  { %v2676_v40 = vpop.f32.mrf.mxu0 }
 0x6f0   :  { %v970_v21 = vadd.f32 %v2659_v29, %v2676_v40 }
 0x6f1   :  { %v1052_v41 = vpop.f32.mrf.mxu0 }
 0x6f2   :  { %v1134_v42 = vmul.f32 %v1052_v41, %v2596_v14 }
 0x6f3   :  { %v2286_v43 = vpop.f32.mrf.mxu0 }
 0x6f4   :  { %v1136_v44 = vsel %vm154_vm2, %v1134_v42, -inf }
 0x6f5   :  { %1137 = vmax.xlane.f32.xlu0 %v1136_v44  ;;  %v2144_v44 = vld [vmem:[#allocation7 + $0xa1] ss:$0 sm:$0xff] }
 0x6f9   :  { %1152 = vadd.xlane.f32.xlu0 %v1151_v46 }
 0x77e   :  { %v1138_v47 = vpop.xlane.xlu0 %1137 }
 0x77f   :  { %v1142_v48 = vsub.f32 %v1134_v42, %v1138_v47 }
 0x781   :  { %v1144_v49 = vmul.f32 1.442695, %v1142_v48 }
 0x782   :  { %v1153_v52 = vpop.xlane.xlu0 %1152 }
 0x783   :  { %2399 = vpow2.f32 %v1144_v49 }
 0x784   :  { %2401 = vrcp.f32 %v1153_v52 }
 0x790   :  { %v2400_v50 = vpop.eup %2399 }
 0x791   :  { %v1148_v51 = vsel %vm154_vm2, %v2400_v50, 0.0  ;;  %v2402_v54 = vpop.eup %2401 }
 0x792   :  { %1149 = vadd.xlane.f32.xlu0 %v1148_v51  ;;  %v1157_v56 = vmul.f32 %v2402_v54, %v2398_v45 }
 0x7a8   :  { %1234 = vrot.lane.b32.xlu0 %v2581_v11, %s2521_s6 }
 0x7ac   :  { %1394 = vrot.lane.b32.xlu0 %v2578_v10, %s2523_s8 }
 0x81b   :  { %v1150_v53 = vpop.xlane.xlu0 %1149 }
 0x81c   :  { %2403 = vrcp.f32 %v1150_v53 }
 0x81f   :  { %v1235_v55 = vpop.permute.xlu0 %1234 }
 0x820   :  { %2298 = vmatpush3.msra.mxu1 %v1235_v55 }
 0x821   :  { %2300 = vmatmul.mubr.msk.f32.vlgmr.msra.gmra.mxu1 %vm154_vm2, %v1157_v56  ;;  %2307 = vmatprep.subr.mxu1 %v2512_v6 }
 0x822   :  { %2308 = vmatpush3.xpose.msk.msra.mxu1 %vm154_vm2, %v1397_v57  ;;  %2309 = vmatprep.mubr.msk.f32.mxu1 %vm2513_vm1, %v2512_v6 }
 0x823   :  { %v1395_v58 = vpop.permute.xlu0 %1394  ;;  %2317 = vmatprep.subr.mxu1 %v2512_v6 }
 0x825   :  { %2310 = vmatmul.mubr.msk.f32.vlgmr.msra.gmra.mxu1 %vm154_vm2, %v1395_v58 }
 0x826   :  { %2319 = vmatprep.mubr.msk.f32.mxu1 %vm2513_vm1, %v2512_v6 }
 0x829   :  { %v2404_v59 = vpop.eup %2403 }
 0x82a   :  { %v1156_v60 = vmul.f32 %v2404_v59, %v2400_v50 }
 0x82c   :  { %2295 = vmatmul.mubr.msk.f32.vlgmr.msra.gmra.mxu0 %vm154_vm2, %v1156_v60 }
 0x82d   :  { %2303 = vmatpush3.msra.mxu0 %v1310_v61 }
 0x82e   :  { %2312 = vmatprep.subr.mxu0 %v2512_v6 }
 0x8e1   :  { %v1306_v62 = vpop.f32.mrf.mxu1 }
 0x8e3   :  { %v2301_v63 = vpop.f32.mrf.mxu1 }
 0x8e4   :  { %v1863_v63 = vld [vmem:[#allocation7 + $0x58] sm:$0xff] }
 0x8e5   :  { %v1468_v0 = vpop.f32.mrf.mxu1 }
 0x8e6   :  { %v1550_v1 = vmul.f32 %v1468_v0, %v2596_v14  ;;  %v1861_v0 = vld [vmem:[#allocation7 + $0x48] sm:$0xff] }
 0x8e7   :  { %v2311_v3 = vpop.f32.mrf.mxu1 }
 0x8e8   :  { %v1552_v4 = vsel %vm154_vm2, %v1550_v1, -inf  ;;  %v1872_v3 = vld [vmem:[#allocation7 + $0x98] sm:$0xff] }
 0x8e9   :  { %1553 = vmax.xlane.f32.xlu0 %v1552_v4  ;;  %v1871_v4 = vld [vmem:[#allocation7 + $0x90] sm:$0xff] }
 0x8ec   :  { %v1230_v8 = vpop.f32.mrf.mxu0 }
 0x8ed   :  { %2304 = vmatprep.mubr.msk.f32.mxu0 %vm154_vm2, %v1230_v8  ;;  %v1869_v8 = vld [vmem:[#allocation7 + $0x80] sm:$0xff] }
 0x8ee   :  { %v2296_v9 = vpop.f32.mrf.mxu0  ;;  %2305 = vmatmul.mubr.msk.f32.vlgmr.msra.gmra.mxu0 %vm154_vm2, %v1306_v62 }
 0x8ef   :  { %2313 = vmatpush3.xpose.msk.msra.mxu0 %vm154_vm2, %v1475_v7  ;;  %2314 = vmatprep.mubr.msk.f32.mxu0 %vm2513_vm1, %v2512_v6  ;;  %v1870_v7 = vld [vmem:[#allocation7 + $0x88] sm:$0xff] }
 0x8f0   :  { %2322 = vmatprep.subr.mxu0 %v2512_v6 }
 0x8f2   :  { %2315 = vmatmul.mubr.msk.f32.vlgmr.msra.gmra.mxu0 %vm154_vm2, %v1473_v12 }
 0x8f3   :  { %2324 = vmatprep.mubr.msk.f32.mxu0 %vm2513_vm1, %v2512_v6 }
 0x972   :  { %v1554_v14 = vpop.xlane.xlu0 %1553 }
 0x973   :  { %v1558_v13 = vsub.f32 %v1550_v1, %v1554_v14  ;;  %v1860_v1 = vld [vmem:[#allocation7 + $0x40] sm:$0xff] }
 0x975   :  { %v1560_v15 = vmul.f32 1.442695, %v1558_v13 }
 0x977   :  { %2405 = vpow2.f32 %v1560_v15 }
 0x984   :  { %v2406_v16 = vpop.eup %2405 }
 0x985   :  { %v1564_v17 = vsel %vm154_vm2, %v2406_v16, 0.0 }
 0x986   :  { %1565 = vadd.xlane.f32.xlu0 %v1564_v17 }
 0x9ae   :  { %v2306_v20 = vpop.f32.mrf.mxu0 }
 0x9af   :  { %v1393_v22 = vadd.f32 %v2306_v20, %v975_v19  ;;  %v2145_v19 = vld [vmem:[#allocation7 + $0xa2] ss:$0 sm:$0xff] }
 0x9b0   :  { %v1383_v23 = vpop.f32.mrf.mxu0 }
 0x9b1   :  { %v1392_v24 = vadd.f32 %v1383_v23, %v970_v21 }
 0x9b2   :  { %v1546_v25 = vpop.f32.mrf.mxu0 }
 0x9b3   :  { %v1551_v6 = vmul.f32 %v1546_v25, %v2599_v18 }
 0x9b4   :  { %v2316_v26 = vpop.f32.mrf.mxu0 }
 0x9b5   :  { %v1555_v28 = vsel %vm154_vm2, %v1551_v6, -inf }
 0x9b6   :  { %1556 = vmax.xlane.f32.xlu1 %v1555_v28  ;;  %v1868_v28 = vld [vmem:[#allocation7 + $0x78] sm:$0xff] }
 0x9c7   :  { %1574 = vrot.lane.b32.xlu1 %v2578_v10, %s2524_s9 }
 0xa0f   :  { %v1566_v30 = vpop.xlane.xlu0 %1565 }
 0xa10   :  { %2407 = vrcp.f32 %v1566_v30  ;;  %v1867_v30 = vld [vmem:[#allocation7 + $0x70] sm:$0xff] }
 0xa1d   :  { %v2408_v31 = vpop.eup %2407 }
 0xa1e   :  { %v1572_v34 = vmul.f32 %v2408_v31, %v2406_v16  ;;  %v1865_v31 = vld [vmem:[#allocation7 + $0x60] sm:$0xff] }
 0xa3f   :  { %v1557_v27 = vpop.xlane.xlu1 %1556 }
 0xa40   :  { %v1559_v32 = vsub.f32 %v1551_v6, %v1557_v27  ;;  %v1866_v27 = vld [vmem:[#allocation7 + $0x68] sm:$0xff] }
 0xa42   :  { %v1562_v33 = vmul.f32 1.442695, %v1559_v32  ;;  %v2147_v32 = vld [vmem:[#allocation7 + $0xa4] ss:$0 sm:$0xff] }
 0xa43   :  { %v1575_v29 = vpop.permute.xlu1 %1574 }
 0xa44   :  { %2409 = vpow2.f32 %v1562_v33  ;;  %2318 = vmatpush3.msra.mxu1 %v1575_v29 }
 0xa45   :  { %2320 = vmatmul.mubr.msk.f32.vlgmr.msra.gmra.mxu1 %vm154_vm2, %v1572_v34  ;;  %2327 = vmatprep.subr.mxu1 %v1726_v36 }
 0xa46   :  { %2328 = vmatpush3.msra.mxu1 %v1726_v36 }
 0xa47   :  { %2343 = vmatprep.subr.mxu1 %v1872_v3 }
 0xa51   :  { %v2410_v18 = vpop.eup %2409 }
 0xa52   :  { %v1567_v35 = vsel %vm154_vm2, %v2410_v18, 0.0 }
 0xa53   :  { %1568 = vadd.xlane.f32.xlu0 %v1567_v35 }
 0xa69   :  { %1650 = vrot.lane.b32.xlu0 %v2581_v11, %s2524_s9 }
 0xadc   :  { %v1569_v10 = vpop.xlane.xlu0 %1568 }
 0xadd   :  { %2411 = vrcp.f32 %v1569_v10  ;;  %v2150_v10 = vld [vmem:[#allocation7 + $0xa5] ss:$0 sm:$0xff] }
 0xae0   :  { %v1651_v37 = vpop.permute.xlu0 %1650 }
 0xae1   :  { %2323 = vmatpush3.msra.mxu0 %v1651_v37 }
 0xae2   :  { %2332 = vmatprep.subr.mxu0 %v1863_v63 }
 0xaea   :  { %v2412_v38 = vpop.eup %2411 }
 0xaeb   :  { %v1573_v39 = vmul.f32 %v2412_v38, %v2410_v18 }
 0xaed   :  { %2325 = vmatmul.mubr.msk.f32.vlgmr.msra.gmra.mxu0 %vm154_vm2, %v1573_v39 }
 0xaee   :  { %2333 = vmatpush3.msra.mxu0 %v1863_v63  ;;  %v2154_v63 = vld [vmem:[#allocation7 + $0xa7] ss:$0 sm:$0xff] }
 0xb05   :  { %v1646_v40 = vpop.f32.mrf.mxu1 }
 0xb06   :  { %2329 = vmatprep.mubr.msk.f32.mxu1 %vm154_vm2, %v1646_v40 }
 0xb07   :  { %v2321_v41 = vpop.f32.mrf.mxu1 }
 0xbad   :  { %v1722_v42 = vpop.f32.mrf.mxu0 }
 0xbae   :  { %2330 = vmatmul.mubr.msk.f32.vlgmr.msra.gmra.mxu1 %vm154_vm2, %v1722_v42 }
 0xbaf   :  { %v2326_v43 = vpop.f32.mrf.mxu0  ;;  %2344 = vmatpush3.msra.mxu1 %v1872_v3 }
 0xbb0   :  { %2345 = vmatprep.subr.mxu1 %v1871_v4 }
 0xbb1   :  { %2346 = vmatpush3.msra.mxu1 %v1871_v4 }
 0xbb2   :  { %2347 = vmatprep.subr.mxu1 %v1870_v7 }
 0xbb3   :  { %2348 = vmatpush3.msra.mxu1 %v1870_v7 }
 0xbb4   :  { %2349 = vmatprep.subr.mxu1 %v1869_v8 }
 0xbb5   :  { %2350 = vmatpush3.msra.mxu1 %v1869_v8 }
 0xbb6   :  { %2351 = vmatprep.subr.mxu1 %v1868_v28 }
 0xbb7   :  { %2352 = vmatpush3.msra.mxu1 %v1868_v28 }
 0xbb8   :  { %2353 = vmatprep.subr.mxu1 %v1867_v30 }
 0xbb9   :  { %2354 = vmatpush3.msra.mxu1 %v1867_v30 }
 0xbba   :  { %2355 = vmatprep.subr.mxu1 %v1866_v27 }
 0xbbb   :  { %2356 = vmatpush3.msra.mxu1 %v1866_v27 }
 0xbbc   :  { %2357 = vmatprep.subr.mxu1 %v1865_v31 }
 0xbbd   :  { %2358 = vmatpush3.msra.mxu1 %v1865_v31 }
 0xc6e   :  { %v2331_v11 = vpop.f32.mrf.mxu1 }
 0xc6f   :  { %v1809_v45 = vadd.f32 %v2331_v11, %v1393_v22 }
 0xc70   :  { %v1799_v46 = vpop.f32.mrf.mxu1 }
 0xc71   :  { %v1816_v47 = vadd.f32 %v2144_v44, %v1809_v45  ;;  %v1808_v48 = vadd.f32 %v1799_v46, %v1392_v24  ;;  %v2146_v24 = vld [vmem:[#allocation7 + $0xa3] ss:$0 sm:$0xff] }
 0xc73   :  { %v1815_v49 = vadd.f32 %v2144_v44, %v1808_v48  ;;  %v1818_v50 = vadd.f32 %v1816_v47, %v2568_v5 }
 0xc75   :  { %v1824_v51 = vsel %vm67_vm0, %v1818_v50, 0.0  ;;  %v1817_v52 = vadd.f32 %v1815_v49, %v2564_v2  ;;  %v1862_v2 = vld [vmem:[#allocation7 + $0x50] sm:$0xff] }
 0xc76   :  { %1825 = vadd.xlane.f32.xlu0 %v1824_v51  ;;  %2334 = vmatprep.subr.mxu0 %v1862_v2 }
 0xc77   :  { %v1821_v53 = vsel %vm67_vm0, %v1817_v52, 0.0  ;;  %2335 = vmatpush3.msra.mxu0 %v1862_v2 }
 0xc78   :  { %1822 = vadd.xlane.f32.xlu1 %v1821_v53  ;;  %2336 = vmatprep.subr.mxu0 %v1861_v0 }
 0xc79   :  { %2337 = vmatpush3.msra.mxu0 %v1861_v0 }
 0xc7a   :  { %2338 = vmatprep.subr.mxu0 %v1860_v1 }
 0xc7b   :  { %2339 = vmatpush3.msra.mxu0 %v1860_v1 }
 0xcff   :  { %v1826_v54 = vpop.xlane.xlu0 %1825 }
 0xd00   :  { %v1829_v55 = vmul.f32 0.03125, %v1826_v54 }
 0xd01   :  { %v1823_v56 = vpop.xlane.xlu1 %1822 }
 0xd02   :  { %v1831_v57 = vsub.f32 %v1818_v50, %v1829_v55  ;;  %v1828_v58 = vmul.f32 0.03125, %v1823_v56 }
 0xd04   :  { %v1830_v59 = vsub.f32 %v1817_v52, %v1828_v58  ;;  %v1833_v60 = vmul.f32 %v1831_v57, %v1831_v57 }
 0xd06   :  { %v1837_v61 = vsel %vm67_vm0, %v1833_v60, 0.0  ;;  %v1832_v62 = vmul.f32 %v1830_v59, %v1830_v59 }
 0xd07   :  { %1838 = vadd.xlane.f32.xlu0 %v1837_v61  ;;  %v2153_v61 = vld [vmem:[#allocation7 + $0xa6] ss:$0 sm:$0xff] }
 0xd08   :  { %v1834_v5 = vsel %vm67_vm0, %v1832_v62, 0.0 }
 0xd09   :  { %1835 = vadd.xlane.f32.xlu1 %v1834_v5 }
 0xd90   :  { %v1839_v9 = vpop.xlane.xlu0 %1838 }
 0xd91   :  { %v1841_v12 = vmul.f32 0.03125, %v1839_v9 }
 0xd92   :  { %v1836_v14 = vpop.xlane.xlu1 %1835 }
 0xd93   :  { %v1843_v13 = vadd.f32 1e-12, %v1841_v12  ;;  %v1840_v15 = vmul.f32 0.03125, %v1836_v14 }
 0xd95   :  { %2413 = vrsqrt.f32 %v1843_v13  ;;  %v1842_v16 = vadd.f32 1e-12, %v1840_v15 }
 0xd97   :  { %2415 = vrsqrt.f32 %v1842_v16 }
 0xda2   :  { %v2414_v17 = vpop.eup %2413 }
 0xda3   :  { %v1847_v20 = vmul.f32 %v2414_v17, %v1831_v57 }
 0xda4   :  { %v2416_v21 = vpop.eup %2415 }
 0xda5   :  { %v1846_v22 = vmul.f32 %v2416_v21, %v1830_v59  ;;  %v1853_v23 = vmul.f32 %v2145_v19, %v1847_v20 }
 0xda7   :  { %v1852_v25 = vmul.f32 %v2145_v19, %v1846_v22  ;;  %v1859_v26 = vadd.f32 %v2146_v24, %v1853_v23 }
 0xda9   :  { %v1858_v6 = vadd.f32 %v2146_v24, %v1852_v25 }
 0xdab   :  { %2340 = vmatprep.mubr.msk.f32.mxu0 %vm67_vm0, %v1858_v6 }
 0xdac   :  { %2341 = vmatmul.mubr.msk.f32.vlgmr.msra.gmra.mxu0 %vm67_vm0, %v1859_v26 }
 0xe6c   :  { %v2342_v33 = vpop.f32.mrf.mxu0 }
 0xe6d   :  { %v1956_v29 = vadd.f32 %v2342_v33, %v2147_v32 }
 0xe6e   :  { %v1950_v34 = vpop.f32.mrf.mxu0 }
 0xe6f   :  { %v1951_v18 = vadd.f32 %v2147_v32, %v1950_v34  ;;  %v1960_v36 = vmax.f32 %v1956_v29, 0.0 }
 0xe71   :  { %v1959_v35 = vmax.f32 %v1951_v18, 0.0 }
 0xe73   :  { %2359 = vmatprep.mubr.msk.f32.mxu1 %vm1965_vm3, %v1959_v35 }
 0xe74   :  { %2360 = vmatmul.mubr.msk.f32.vlgmr.msra.gmra.mxu1 %vm1965_vm3, %v1960_v36 }
 0xf34   :  { %v2361_v37 = vpop.f32.mrf.mxu1 }
 0xf35   :  { %v2044_v38 = vadd.f32 %v2361_v37, %v2150_v10 }
 0xf36   :  { %v2038_v39 = vpop.f32.mrf.mxu1 }
 0xf37   :  { %v2039_v40 = vadd.f32 %v2150_v10, %v2038_v39  ;;  %v2048_v41 = vadd.f32 %v2044_v38, %v1859_v26 }
 0xf39   :  { %v2054_v42 = vsel %vm67_vm0, %v2048_v41, 0.0  ;;  %v2047_v43 = vadd.f32 %v2039_v40, %v1858_v6 }
 0xf3a   :  { %2055 = vadd.xlane.f32.xlu0 %v2054_v42 }
 0xf3b   :  { %v2051_v11 = vsel %vm67_vm0, %v2047_v43, 0.0 }
 0xf3c   :  { %2052 = vadd.xlane.f32.xlu1 %v2051_v11 }
 0xfc3   :  { %v2056_v44 = vpop.xlane.xlu0 %2055 }
 0xfc4   :  { %v2058_v45 = vmul.f32 0.03125, %v2056_v44 }
 0xfc5   :  { %v2053_v46 = vpop.xlane.xlu1 %2052 }
 0xfc6   :  { %v2060_v47 = vsub.f32 %v2048_v41, %v2058_v45  ;;  %v2057_v48 = vmul.f32 0.03125, %v2053_v46 }
 0xfc8   :  { %v2059_v49 = vsub.f32 %v2047_v43, %v2057_v48  ;;  %v2062_v50 = vmul.f32 %v2060_v47, %v2060_v47 }
 0xfca   :  { %v2066_v51 = vsel %vm67_vm0, %v2062_v50, 0.0  ;;  %v2061_v52 = vmul.f32 %v2059_v49, %v2059_v49 }
 0xfcb   :  { %2067 = vadd.xlane.f32.xlu0 %v2066_v51 }
 0xfcc   :  { %v2063_v53 = vsel %vm67_vm0, %v2061_v52, 0.0 }
 0xfcd   :  { %2064 = vadd.xlane.f32.xlu1 %v2063_v53 }
0x1054   :  { %v2068_v54 = vpop.xlane.xlu0 %2067 }
0x1055   :  { %v2070_v55 = vmul.f32 0.03125, %v2068_v54 }
0x1056   :  { %v2065_v56 = vpop.xlane.xlu1 %2064 }
0x1057   :  { %v2072_v57 = vadd.f32 1e-12, %v2070_v55  ;;  %v2069_v58 = vmul.f32 0.03125, %v2065_v56 }
0x1059   :  { %2417 = vrsqrt.f32 %v2072_v57  ;;  %v2071_v59 = vadd.f32 1e-12, %v2069_v58 }
0x105b   :  { %2419 = vrsqrt.f32 %v2071_v59 }
0x1066   :  { %v2418_v60 = vpop.eup %2417 }
0x1067   :  { %v2076_v62 = vmul.f32 %v2418_v60, %v2060_v47 }
0x1068   :  { %v2420_v5 = vpop.eup %2419 }
0x1069   :  { %v2075_v2 = vmul.f32 %v2420_v5, %v2059_v49  ;;  %v2082_v0 = vmul.f32 %v2153_v61, %v2076_v62 }
0x106b   :  { %v2081_v1 = vmul.f32 %v2153_v61, %v2075_v2  ;;  %v2088_v3 = vadd.f32 %v2154_v63, %v2082_v0 }
0x106d   :  { %v2087_v4 = vadd.f32 %v2154_v63, %v2081_v1  ;;  %2090 = vst.msk [vmem:[#allocation8 + $0x8] sm:$0xff] %vm67_vm0, %v2088_v3 }
0x106f   :  { %2089 = vst.msk [vmem:[#allocation8] sm:$0xff] %vm67_vm0, %v2087_v4 }
0x1070   :  { %2492 = shalt.err (!%p2489_p5)
}
0x1071   :  { %2102 = dma.vmem_to_hbm [thread:$0]  %s2097_s11, 256, %s2743_s3, [#allocation4], %s2509_s17, %s2509_s17, %s2510_s18  }
0x1072   :  { %2505 = dma.done.wait [#allocation4], 256  }
0x1073   :  { %2506 = vsyncadd [#allocation4], 4294967040 }
0x1074   :  { %2106 = vsyncpa [#allocation3], 1 }
0x1075   :  { %2107 = vsyncpa [#allocation6], 1 }
0x1076   :  { %2108 = vsyncpa [#allocation4], 1 }

</bundles_post_ra>
